<compile_context>
chip_gen: v7x
topology: tpu7x:2x2x1
jax: 0.10.0
libtpu: 0.0.40
codegen_flags: <defaults>
</compile_context>

<pallas_src>
import functools

import numpy as np
import jax
import jax.numpy as jnp
from jax.experimental import pallas as pl
from jax.experimental.pallas import tpu as pltpu


def _round_up(a, m):
    return ((a + m - 1) // m) * m


def _col_select_matrix(W, Wo, stride, dtype=jnp.float32):
    """One-hot E of shape (stride*W, Wo): E[w, wo] = 1 iff w == wo*stride.

    Each input row-group of length stride*W holds rows h = ho*s + r (r in [0, s));
    selecting r == 0, w == wo*s implements x[..., ho*s, wo*s]."""
    e = np.zeros((stride * W, Wo), dtype=np.float32)
    e[np.arange(Wo) * stride, np.arange(Wo)] = 1.0
    return jnp.asarray(e, dtype=dtype)


def _choose_batch_tile(B, C, Ho, Wo, sW, itemsize, budget_bytes=20 * 1024 * 1024):
    """Largest batch tile whose padded, double-buffered VMEM footprint fits the budget.

    Returns None if even a single batch element does not fit (caller falls back)."""
    in_pb = C * _round_up(Ho, 8) * _round_up(sW, 128) * itemsize          # input tile / sample
    out_pb = 2 * C * _round_up(Ho, 8) * _round_up(Wo, 128) * itemsize     # (sub + zeros) / sample
    per_b = 2 * (in_pb + out_pb)                                          # double-buffered
    if per_b > budget_bytes:
        return None
    cap = budget_bytes // per_b
    divisors = [d for d in range(1, B + 1) if B % d == 0]
    bt = max(d for d in divisors if d <= cap)
    # Keep >= 2 grid steps when possible so both TensorCores (megacore / v7x) get work.
    if B >= 2 and B // bt < 2:
        smaller = [d for d in divisors if B // d >= 2]
        if smaller:
            bt = max(smaller)
    return bt


def _shortcut_a_kernel(x_ref, e_ref, o_ref):
    # x_ref: (bt, C, Ho, s*W)   e_ref: (s*W, Wo)   o_ref: (bt, 2, C, Ho, Wo)
    bt, C, Ho, sW = x_ref.shape
    Wo = e_ref.shape[1]
    x2 = x_ref[...].reshape(bt * C * Ho, sW)          # merge leading dims (layout-free)
    sub = jnp.dot(x2, e_ref[...],
                  preferred_element_type=jnp.float32,
                  precision=jax.lax.Precision.HIGHEST)  # exact 0/1 selection, tiny K
    sub = sub.reshape(bt, C, Ho, Wo).astype(o_ref.dtype)
    o_ref[:, 0, :, :, :] = sub                        # real channels
    o_ref[:, 1, :, :, :] = jnp.zeros_like(sub)        # fused zero half


@functools.partial(jax.jit, static_argnums=1)
def shortcut_a(x_nchw, stride):
    """ShortcutA forward. Input NCHW, output NCHW with 2*C channels."""
    B, C, H, W = x_nchw.shape
    Ho = (H - 1) // stride + 1          # AvgPool2d(kernel=1, stride=s) output size
    Wo = (W - 1) // stride + 1
    itemsize = np.dtype(x_nchw.dtype).itemsize

    use_kernel = (stride > 1
                  and H % stride == 0
                  and jnp.issubdtype(x_nchw.dtype, jnp.floating))
    bt = _choose_batch_tile(B, C, Ho, Wo, stride * W, itemsize) if use_kernel else None

    if bt is None:
        # TODO(synk): stride==1, H % stride != 0, non-float dtypes and VMEM-oversized
        # per-sample tiles use plain XLA (strided slice + concat) instead of Pallas.
        sub = x_nchw[:, :, ::stride, ::stride]
        return jnp.concatenate([sub, jnp.zeros_like(sub)], axis=1)

    sW = stride * W
    x4 = x_nchw.reshape(B, C, Ho, sW)                 # free view, no transpose
    e = _col_select_matrix(W, Wo, stride)

    out5 = pl.pallas_call(
        _shortcut_a_kernel,
        out_shape=jax.ShapeDtypeStruct((B, 2, C, Ho, Wo), x_nchw.dtype),
        grid=(B // bt,),
        in_specs=[
            pl.BlockSpec((bt, C, Ho, sW), lambda i: (i, 0, 0, 0)),
            pl.BlockSpec((sW, Wo), lambda i: (0, 0)),   # tiny (<= few KiB), resident
        ],
        out_specs=pl.BlockSpec((bt, 2, C, Ho, Wo), lambda i: (i, 0, 0, 0, 0)),
        compiler_params=pltpu.CompilerParams(
            dimension_semantics=("parallel",),
            vmem_limit_bytes=48 * 1024 * 1024),
        cost_estimate=pl.CostEstimate(
            flops=2 * B * C * Ho * sW * Wo,
            transcendentals=0,
            bytes_accessed=(B * C * H * W + 2 * B * C * Ho * Wo) * itemsize),
    )(x4, e)

    return out5.reshape(B, 2 * C, Ho, Wo)             # free view back to NCHW


def shortcut_a_reference(x_nchw, stride):
    sub = x_nchw[:, :, ::stride, ::stride]
    return jnp.concatenate([sub, jnp.zeros_like(sub)], axis=1)


if __name__ == "__main__":
    key = jax.random.PRNGKey(0)
    B, C, H, W = 2, 4, 16, 16
    stride = 2
    x = jax.random.normal(key, (B, C, H, W), dtype=jnp.float32)

    out = jax.block_until_ready(shortcut_a(x, stride))
    ref = shortcut_a_reference(x, stride)

    Ho = (H - 1) // stride + 1
    Wo = (W - 1) // stride + 1
    assert out.shape == (B, 2 * C, Ho, Wo), out.shape
    assert out.dtype == x.dtype, out.dtype
    assert jnp.allclose(out, ref, atol=1e-6, rtol=1e-6), float(jnp.max(jnp.abs(out - ref)))

    print("KERNEL_OK")
</pallas_src>

<mosaic_0001>
module attributes {stable_mosaic.version = 11 : i64} {
  func.func @_shortcut_a_kernel(%arg0: i32, %arg1: memref<1x4x8x32xf32, #tpu.memory_space<vmem>>, %arg2: memref<32x8xf32, #tpu.memory_space<vmem>>, %arg3: memref<1x2x4x8x8xf32, #tpu.memory_space<vmem>>) attributes {dimension_semantics = [#tpu.dimension_semantics<parallel>], iteration_bounds = array<i64: 2>, scalar_prefetch = 0 : i64, scratch_operands = 0 : i64, tpu.core_type = #tpu.core_type<tc>, window_params = [{transform_indices = @transform_0, window_bounds = array<i64: 1, 4, 8, 32>}, {pipeline_mode = #tpu.pipeline_mode<synchronous>, transform_indices = @transform_1, window_bounds = array<i64: 32, 8>}, {transform_indices = @transform_2, window_bounds = array<i64: 1, 2, 4, 8, 8>}]} {
    %c0 = arith.constant 0 : index
    %c0_0 = arith.constant 0 : index
    %c0_1 = arith.constant 0 : index
    %c0_2 = arith.constant 0 : index
    %0 = vector.load %arg1[%c0, %c0_0, %c0_1, %c0_2] : memref<1x4x8x32xf32, #tpu.memory_space<vmem>>, vector<1x4x8x32xf32>
    %1 = vector.shape_cast %0 : vector<1x4x8x32xf32> to vector<32x32xf32>
    %c0_3 = arith.constant 0 : index
    %c0_4 = arith.constant 0 : index
    %2 = vector.load %arg2[%c0_3, %c0_4] : memref<32x8xf32, #tpu.memory_space<vmem>>, vector<32x8xf32>
    %cst = arith.constant dense<0.000000e+00> : vector<32x8xf32>
    %3 = tpu.matmul %1, %2, %cst {dimension_numbers = #tpu.dot_dimension_numbers<[1], [0], [0], [1], [0, 0, 1, 1], [], []>, precision = #tpu.contract_precision<fp32>} : vector<32x32xf32>, vector<32x8xf32>, vector<32x8xf32> -> vector<32x8xf32>
    %4 = vector.shape_cast %3 : vector<32x8xf32> to vector<1x4x8x8xf32>
    %c0_5 = arith.constant 0 : index
    %c0_6 = arith.constant 0 : index
    %c0_7 = arith.constant 0 : index
    %c0_8 = arith.constant 0 : index
    %c0_9 = arith.constant 0 : index
    %5 = vector.load %arg3[%c0_5, %c0_6, %c0_7, %c0_8, %c0_9] : memref<1x2x4x8x8xf32, #tpu.memory_space<vmem>>, vector<1x1x4x8x8xf32>
    %6 = vector.shape_cast %5 : vector<1x1x4x8x8xf32> to vector<1x4x8x8xf32>
    %7 = vector.shape_cast %4 : vector<1x4x8x8xf32> to vector<1x1x4x8x8xf32>
    tpu.vector_store %arg3[%c0_5, %c0_6, %c0_7, %c0_8, %c0_9], %7 {strides = array<i32>} : memref<1x2x4x8x8xf32, #tpu.memory_space<vmem>>, vector<1x1x4x8x8xf32>,
    %cst_10 = arith.constant 0.000000e+00 : f32
    %8 = vector.broadcast %cst_10 : f32 to vector<1x4x8x8xf32>
    %c0_11 = arith.constant 0 : index
    %c1 = arith.constant 1 : index
    %c0_12 = arith.constant 0 : index
    %c0_13 = arith.constant 0 : index
    %c0_14 = arith.constant 0 : index
    %9 = vector.load %arg3[%c0_11, %c1, %c0_12, %c0_13, %c0_14] : memref<1x2x4x8x8xf32, #tpu.memory_space<vmem>>, vector<1x1x4x8x8xf32>
    %10 = vector.shape_cast %9 : vector<1x1x4x8x8xf32> to vector<1x4x8x8xf32>
    %11 = vector.shape_cast %8 : vector<1x4x8x8xf32> to vector<1x1x4x8x8xf32>
    tpu.vector_store %arg3[%c0_11, %c1, %c0_12, %c0_13, %c0_14], %11 {strides = array<i32>} : memref<1x2x4x8x8xf32, #tpu.memory_space<vmem>>, vector<1x1x4x8x8xf32>,
    return
  }
  func.func @transform_0(%arg0: i32) -> (i32, i32, i32, i32) {
    %c0_i32 = arith.constant 0 : i32
    %c0_i32_0 = arith.constant 0 : i32
    %c0_i32_1 = arith.constant 0 : i32
    %c0_i32_2 = arith.constant 0 : i32
    return %arg0, %c0_i32, %c0_i32_0, %c0_i32_1 : i32, i32, i32, i32
  }
  func.func @transform_1(%arg0: i32) -> (i32, i32) {
    %c0_i32 = arith.constant 0 : i32
    %c0_i32_0 = arith.constant 0 : i32
    %c0_i32_1 = arith.constant 0 : i32
    return %c0_i32, %c0_i32_0 : i32, i32
  }
  func.func @transform_2(%arg0: i32) -> (i32, i32, i32, i32, i32) {
    %c0_i32 = arith.constant 0 : i32
    %c0_i32_0 = arith.constant 0 : i32
    %c0_i32_1 = arith.constant 0 : i32
    %c0_i32_2 = arith.constant 0 : i32
    %c0_i32_3 = arith.constant 0 : i32
    return %arg0, %c0_i32, %c0_i32_0, %c0_i32_1, %c0_i32_2 : i32, i32, i32, i32, i32
  }
}

</mosaic_0001>

<bundles_post_ra>
// kernel: shortcut_a.1
= control target key start
LH: loop header
LB: loop body
LE: loop exit
PB: predicated region body
PF: predicated region fallthrough
CT: control target
= control target key end

     0   :  { %7 = vsyncpa [#allocation3], 0  ;;  %s1387_s0 = inlined_call_operand.vmem [shape: f32[2,4,8,32], index: 0, kind: input, shape index: {}]   ;;  %s1388_s1 = inlined_call_operand.vmem [shape: f32[32,8], index: 1, kind: input, shape index: {}]   ;;  %s1389_s2 = inlined_call_operand.hbm [shape: f32[2,2,4,8,8], index: 2, kind: output, shape index: {}]  }
   0x1   :  { %9 = vsyncpa [#allocation3 + $0x1], 0  ;;  %s1206_s9 = smov 0   ;;  %s1208_s10 = smov 0  }
   0x2   :  { %s1210_s11 = smov 0   ;;  %s1212_s12 = smov 0  }
   0x3 LB: > { %s1227_s13 = sadd.s32 4294967295, %s1185_s12   ;;  %s863_s14 = sadd.s32 4294967294, %s1185_s12   ;;  %s1185_s12 = sphi %s1212_s12, %s1395_s12   ;;  %s1181_s11 = sphi %s1210_s11, %s1394_s11   ;;  %s1177_s10 = sphi %s1208_s10, %s1393_s10   ;;  %s1173_s9 = sphi %s1206_s9, %s1392_s9  }
   0x4   : > { %s1231_s15 = sadd.s32 1, %s1185_s12   ;;  %s69_s16 = sadd.s32 1, %s1181_s11 }
   0x5   : > { %s66_s17 = ssub.s32 %s1185_s12, %s1231_s15  ;;  %p79_p0 = scmp.ne.s32.totalorder %s1181_s11, %s1177_s10 }
   0x6   : > { %p67_p1 = scmp.eq.s32.totalorder %s66_s17, 0  ;;  %p80_p2 = scmp.eq.s32.totalorder %s1227_s13, 1 }
   0x7   : > { %p85_p3 = scmp.ne.s32.totalorder %s1177_s10, %s1173_s9  ;;  %p86_p4 = scmp.eq.s32.totalorder %s863_s14, 1 }
   0x8   : > { %s1242_s18 = scalar_select %p67_p1, %s1181_s11, %s69_s16  }
   0x9   : > { %p1244_p5 = por %p80_p2, %p79_p0  ;;  %p1248_p6 = por %p86_p4, %p85_p3 }
   0xa   : > { %p866_p7 = scmp.ge.s32.totalorder %s1185_s12, 1  ;;  %p115_p8 = scmp.lt.s32.totalorder %s1185_s12, 3 }
   0xc   : > { %p116_p9 = pnand %p866_p7, %p115_p8 }
   0xd   : > { %v146_v0 = vld [vmem:[%s1388_s1] sm:$0xff] (!%p116_p9)  ;;  %v147_v1 = vld [vmem:[%s1388_s1 + $0x8] sm:$0xff] (!%p116_p9)  ;;  %v148_v2 = vld [vmem:[%s1388_s1 + $0x10] sm:$0xff] (!%p116_p9)  ;;  %p137_p10 = scmp.lt.s32.totalorder (!%p116_p9), %s1227_s13, 1  ;;  %vm150_vm0 = vcmask (!%p116_p9), 261120   ;;  %s134_s6 = sand.u32 (!%p116_p9), 1, %s1177_s10  }
   0xe   : > { %119 = sbr.rel (%p116_p9) target bundleno = 288 (0x120), region = 28  ;;  %v164_v3 = vand.u32 (!%p116_p9), 4294901760, %v146_v0  ;;  %v167_v4 = vand.u32 (!%p116_p9), 4294901760, %v147_v1  ;;  %v149_v5 = vld [vmem:[%s1388_s1 + $0x18] sm:$0xff] (!%p116_p9)  ;;  %v170_v6 = vand.u32 (!%p116_p9), 4294901760, %v148_v2  ;;  %s867_s7 = sshll.u32 (!%p116_p9), %s134_s6, 6 }
   0xf   : > { %v173_v7 = vand.u32 (!%p116_p9), 4294901760, %v149_v5  ;;  %vm777_vm1 = vcmask (!%p116_p9), 64512   ;;  %s136_s8 = scalar_lea.vmem (!%p116_p9), [#allocation2], %s867_s7  ;;  %v1187_v60 = vmov (!%p116_p9), 0.0   ;;  %s880_s14 = sshll.u32 (!%p116_p9), %s1227_s13, 10 }
  0x10   : > { %v1268_v8 = vpack.c.bf16 (!%p116_p9), %v167_v4, %v164_v3  ;;  %v1270_v9 = vsub.f32 (!%p116_p9), %v146_v0, %v164_v3  ;;  %v1272_v10 = vsub.f32 (!%p116_p9), %v147_v1, %v167_v4  ;;  %v1274_v11 = vsub.f32 (!%p116_p9), %v148_v2, %v170_v6  ;;  %870 = vst.msk [vmem:[%s136_s8 + $0x20] sm:$0xff] (!%p116_p9), %vm777_vm1, %v1187_v60  ;;  %s801_s16 = sshll.u32 (!%p116_p9), %s136_s8, 4  ;;  %s1340_s22 = scalar_lea.hbm (!%p116_p9), %s1389_s2, %s880_s14  ;;  %s1342_s16 = int_to_ptr.vmem [resolvable:$true] %s801_s16 }
  0x11   : > { %v1276_v12 = vpack.c.bf16 (!%p116_p9), %v173_v7, %v170_v6  ;;  %v1278_v13 = vsub.f32 (!%p116_p9), %v149_v5, %v173_v7  ;;  %871 = vst.msk [vmem:[%s136_s8 + $0x28] sm:$0xff] (!%p116_p9), %vm777_vm1, %v1187_v60  ;;  %872 = vst.msk [vmem:[%s136_s8 + $0x30] sm:$0xff] (!%p116_p9), %vm777_vm1, %v1187_v60  ;;  %s1123_s23 = scalar_lea.vmem (!%p116_p9), %s1342_s16, 1024  ;;  %s1188_s24 = smov (!%p116_p9), [#allocation2]  }
  0x12   : > { %1038 = vmatprep.subr.bf16.mxu0 (!%p116_p9), %v1268_v8  ;;  %1014 = vmatprep.subr.bf16.mxu1 (!%p116_p9), %v1268_v8  ;;  %v275_v14 = vand.u32 (!%p116_p9), 4294901760, %v1270_v9  ;;  %v282_v15 = vand.u32 (!%p116_p9), 4294901760, %v1272_v10  ;;  %v289_v19 = vand.u32 (!%p116_p9), 4294901760, %v1274_v11  ;;  %v1029_v58 = vpack.c.bf16 (!%p116_p9), %v1272_v10, %v1270_v9  ;;  %873 = vst.msk [vmem:[%s136_s8 + $0x38] sm:$0xff] (!%p116_p9), %vm777_vm1, %v1187_v60  ;;  %p1124_p11 = scmp.ne.s32.totalorder (!%p116_p9), %s1342_s16, %s1123_s23  ;;  %s1127_s25 = sshll.u32 (!%p116_p9), %s1188_s24, 4  ;;  %s1128_s25 = int_to_ptr.vmem [resolvable:$false] %s1127_s25 }
  0x13   : > { %1040 = vmatpush3.bf16.msra.mxu0 (!%p116_p9), %v1268_v8  ;;  %1016 = vmatpush3.bf16.msra.mxu1 (!%p116_p9), %v1268_v8  ;;  %v296_v20 = vand.u32 (!%p116_p9), 4294901760, %v1278_v13  ;;  %v1033_v59 = vpack.c.bf16 (!%p116_p9), %v1278_v13, %v1274_v11  ;;  %s1129_s26 = scalar_lea.vmem (!%p116_p9), %s1128_s25, 2048  ;;  %p1130_p0 = scmp.lt.s32.totalorder (!%p116_p9), %s1342_s16, %s1128_s25 }
  0x14   : > { %1042 = vmatprep.subr.bf16.mxu0 (!%p116_p9), %v1276_v12  ;;  %1018 = vmatprep.subr.bf16.mxu1 (!%p116_p9), %v1276_v12  ;;  %v1045_v23 = vpack.c.bf16 (!%p116_p9), %v282_v15, %v275_v14  ;;  %v276_v24 = vsub.f32 (!%p116_p9), %v1270_v9, %v275_v14  ;;  %v283_v28 = vsub.f32 (!%p116_p9), %v1272_v10, %v282_v15  ;;  %p1125_p12 = pnand (!%p116_p9), %p1124_p11, %p1244_p5  ;;  %p1131_p1 = scmp.lt.s32.totalorder (!%p116_p9), %s1129_s26, %s1123_s23 }
  0x15   : > { %s138_s29 = scalar_select %p137_p10, %s1227_s13, 1  ;;  %v290_v38 = vsub.f32 %v1274_v11, %v289_v19  ;;  %v297_v39 = vsub.f32 %v1278_v13, %v296_v20  ;;  %v1049_v45 = vpack.c.bf16 %v296_v20, %v289_v19 }
  0x16   : > { %v277_v30 = vand.u32 4294901760, %v276_v24  ;;  %v284_v35 = vand.u32 4294901760, %v283_v28  ;;  %s1346_s13 = scalar_lea.sflag [#allocation3], %s134_s6  ;;  %p1126_p13 = pneg %p1125_p12 }
  0x17   : > { %s879_s30 = sshll.u32 %s138_s29, 5  ;;  %1044 = vmatpush3.bf16.msra.mxu0 %v1276_v12  ;;  %1020 = vmatpush3.bf16.msra.mxu1 %v1276_v12  ;;  %v291_v46 = vand.u32 4294901760, %v290_v38  ;;  %v298_v47 = vand.u32 4294901760, %v297_v39  ;;  %p1132_p2 = por %p1131_p1, %p1130_p0 }
  0x18   : > { %s141_s5 = scalar_lea.vmem %s1387_s0, %s879_s30  ;;  %1046 = vmatprep.subr.bf16.mxu0 %v1045_v23  ;;  %v1021_v42 = vpack.c.bf16 %v284_v35, %v277_v30 }
  0x19   : > { %v142_v16 = vld [vmem:[%s141_s5] sm:$0xff]  ;;  %v143_v17 = vld [vmem:[%s141_s5 + $0x8] sm:$0xff]  ;;  %v144_v18 = vld [vmem:[%s141_s5 + $0x10] sm:$0xff]  ;;  %v1025_v56 = vpack.c.bf16 %v298_v47, %v291_v46  ;;  %p1133_p3 = pnand %p1132_p2, %p1126_p13 }
  0x1a   : > { %v152_v21 = vsel %vm150_vm0, %v142_v16, 0  ;;  %v155_v22 = vsel %vm150_vm0, %v143_v17, 0  ;;  %v145_v25 = vld [vmem:[%s141_s5 + $0x18] sm:$0xff]  ;;  %v158_v29 = vsel %vm150_vm0, %v144_v18, 0  ;;  %1022 = vmatprep.subr.bf16.mxu1 %v1021_v42 }
  0x1b   : > { %v1296_v26 = vand.u32 4294901760, %v152_v21  ;;  %v1298_v27 = vand.u32 4294901760, %v155_v22  ;;  %v1302_v31 = vand.u32 4294901760, %v158_v29  ;;  %v161_v32 = vsel %vm150_vm0, %v145_v25, 0 }
  0x1c   : > { %v262_v36 = vand.u32 4294901760, %v161_v32 }
  0x1d   : > { %v233_v33 = vsub.f32 %v152_v21, %v1296_v26  ;;  %v243_v34 = vsub.f32 %v155_v22, %v1298_v27  ;;  %v253_v37 = vsub.f32 %v158_v29, %v1302_v31 }
  0x1e   : > { %v263_v43 = vsub.f32 %v161_v32, %v262_v36 }
  0x1f   : > { %v234_v40 = vand.u32 4294901760, %v233_v33  ;;  %v244_v41 = vand.u32 4294901760, %v243_v34  ;;  %v254_v44 = vand.u32 4294901760, %v253_v37 }
  0x20   : > { %v264_v50 = vand.u32 4294901760, %v263_v43 }
  0x21   : > { %979 = vmatprep.mubr.f32.mxu0 %v234_v40  ;;  %v235_v48 = vsub.f32 %v233_v33, %v234_v40  ;;  %v245_v49 = vsub.f32 %v243_v34, %v244_v41  ;;  %v255_v51 = vsub.f32 %v253_v37, %v254_v44 }
  0x22   : > { %980 = vmatmul.mubr.f32.vlgmr.msra.gmra.mrb[0].mxu0 %v244_v41  ;;  %v265_v54 = vsub.f32 %v263_v43, %v264_v50 }
  0x23   : > { %1048 = vmatpush3.bf16.msra.mxu0 %v1045_v23  ;;  %v236_v52 = vand.u32 4294901760, %v235_v48  ;;  %982 = vmatprep.mubr.f32.mxu0 %v254_v44  ;;  %v246_v53 = vand.u32 4294901760, %v245_v49  ;;  %v256_v55 = vand.u32 4294901760, %v255_v51 }
  0x24   : > { %1050 = vmatprep.subr.bf16.mxu0 %v1049_v45  ;;  %v266_v57 = vand.u32 4294901760, %v265_v54 }
  0x25   : > { %937 = vmatprep.mubr.f32.mxu1 %v236_v52 }
  0x26   : > { %938 = vmatmul.mubr.f32.vlgmr.msra.gmra.mrb[0].mxu1 %v246_v53  ;;  %983 = vmatmul.mubr.f32.gmra.mrb[2].mxu0 %v264_v50 }
  0x27   : > { %1024 = vmatpush3.bf16.msra.mxu1 %v1021_v42  ;;  %1052 = vmatpush3.bf16.msra.mxu0 %v1049_v45 }
  0x28   : > { %940 = vmatprep.mubr.f32.mxu1 %v256_v55  ;;  %1026 = vmatprep.subr.bf16.mxu1 %v1025_v56 }
  0x29   : > { %993 = vmatprep.mubr.f32.mxu0 %v1296_v26  ;;  %1054 = vmatprep.subr.bf16.mxu0 %v1268_v8 }
  0x2a   : > { %941 = vmatmul.mubr.f32.gmra.mrb[2].mxu1 %v266_v57  ;;  %994 = vmatmul.mubr.f32.vlgmr.msra.gmra.mrb[0].mxu0 %v1298_v27 }
  0x2b   : > { %1028 = vmatpush3.bf16.msra.mxu1 %v1025_v56  ;;  %1056 = vmatpush3.bf16.msra.mxu0 %v1268_v8 }
  0x2c   : > { %951 = vmatprep.mubr.f32.mxu1 %v1296_v26  ;;  %1030 = vmatprep.subr.bf16.mxu1 %v1029_v58 }
  0x2d   : > { %996 = vmatprep.mubr.f32.mxu0 %v1302_v31  ;;  %1058 = vmatprep.subr.bf16.mxu0 %v1276_v12 }
  0x2e   : > { %952 = vmatmul.mubr.f32.vlgmr.msra.gmra.mrb[0].mxu1 %v1298_v27  ;;  %997 = vmatmul.mubr.f32.gmra.mrb[2].mxu0 %v262_v36 }
  0x2f   : > { %1032 = vmatpush3.bf16.msra.mxu1 %v1029_v58  ;;  %1060 = vmatpush3.bf16.msra.mxu0 %v1276_v12 }
  0x30   : > { %954 = vmatprep.mubr.f32.mxu1 %v1302_v31  ;;  %1034 = vmatprep.subr.bf16.mxu1 %v1033_v59 }
  0x31   : > { %1007 = vmatprep.mubr.f32.mxu0 %v1296_v26 }
  0x32   : > { %955 = vmatmul.mubr.f32.gmra.mrb[2].mxu1 %v262_v36  ;;  %1008 = vmatmul.mubr.f32.vlgmr.msra.gmra.mrb[0].mxu0 %v1298_v27 }
  0x33   : > { %1036 = vmatpush3.bf16.msra.mxu1 %v1033_v59  ;;  %965 = vmatprep.mubr.f32.mxu1 %v233_v33 }
  0x34   : > { %1010 = vmatprep.mubr.f32.mxu0 %v1302_v31 }
  0x36   : > { %966 = vmatmul.mubr.f32.vlgmr.msra.gmra.mrb[0].mxu1 %v243_v34  ;;  %1011 = vmatmul.mubr.f32.gmra.mrb[2].mxu0 %v262_v36 }
  0x37   : > { %968 = vmatprep.mubr.f32.mxu1 %v253_v37 }
  0x3a   : > { %969 = vmatmul.mubr.f32.gmra.mrb[2].mxu1 %v263_v43 }
 0x105   : > { %v1009_v61 = vpop.f32.mrb[0].mxu0 }
 0x106   : > { %v755_v62 = vpop.f32.mrb[1].mxu0 }
 0x109   : > { %v967_v63 = vpop.f32.mrb[0].mxu1  ;;  %v1012_v0 = vpop.f32.mrb[2].mxu0 }
 0x10a   : > { %v1061_v1 = vadd.f32 %v1009_v61, %v967_v63  ;;  %v457_v2 = vpop.f32.mrb[1].mxu1  ;;  %v767_v3 = vpop.f32.mrb[3].mxu0 }
 0x10b   : > { %v1062_v4 = vadd.f32 %v755_v62, %v457_v2 }
 0x10c   : > { %779 = vst.msk [vmem:[%s136_s8 + $0x8] sm:$0xff] %vm777_vm1, %v1061_v1 }
 0x10d   : > { %778 = vst.msk [vmem:[%s136_s8] sm:$0xff] %vm777_vm1, %v1062_v4  ;;  %v970_v5 = vpop.f32.mrb[2].mxu1 }
 0x10e   : > { %v1063_v6 = vadd.f32 %v1012_v0, %v970_v5  ;;  %v471_v7 = vpop.f32.mrb[3].mxu1 }
 0x10f   : > { %v1064_v8 = vadd.f32 %v767_v3, %v471_v7 }
 0x110   : > { %781 = vst.msk [vmem:[%s136_s8 + $0x18] sm:$0xff] %vm777_vm1, %v1063_v6 }
 0x111   : > { %780 = vst.msk [vmem:[%s136_s8 + $0x10] sm:$0xff] %vm777_vm1, %v1064_v8 }
 0x112   : > { %1136 = shalt.err (!%p1133_p3)
}
 0x113   : > { %s1137_s27 = scalar_lea.hbm %s1340_s22, 1024  ;;  %s1141_s30 = scalar_lea.hbm %s1389_s2, 2048 }
 0x114   : > { %p1138_p4 = scmp.ne.s32.totalorder %s1340_s22, %s1137_s27  ;;  %p1142_p9 = scmp.lt.u32.totalorder %s1340_s22, %s1389_s2 }
 0x115   : > { %p1143_p10 = scmp.lt.u32.totalorder %s1141_s30, %s1137_s27  ;;  %p1145_p12 = scmp.lt.u32.totalorder %s1137_s27, %s1340_s22 }
 0x116   : > { %p1139_p7 = pnand %p1138_p4, %p1244_p5 }
 0x117   : > { %p1144_p11 = por %p1143_p10, %p1142_p9 }
 0x118   : > { %p1140_p8 = pneg %p1139_p7 }
 0x119   : > { %p1146_p13 = por %p1145_p12, %p1144_p11 }
 0x11b   : > { %p1147_p0 = pnand %p1146_p13, %p1140_p8 }
 0x11d   : > { %1150 = shalt.err (!%p1147_p0)
}
 0x11e   : > { %s1189_s5 = smov 128   ;;  %s1190_s6 = smov 8  }
 0x11f   : > { %1081 = dma.vmem_to_hbm [thread:$0]  (%p1244_p5), %s1342_s16, 1024, %s1340_s22, %s1346_s13, %s1189_s5, %s1189_s5, %s1190_s6  }
 0x120 PF: > { %p1087_p1 = scmp.ge.s32.totalorder %s1185_s12, 2  ;;  %s816_s7 = sand.u32 1, %s1173_s9  }
 0x121   : > { %s817_s8 = scalar_lea.sflag [#allocation3], %s816_s7 }
 0x122   : > { %p1084_p2 = pnand %p1087_p1, %p1248_p6 }
 0x124   : > { %1168 = dma.done.wait (!%p1084_p2), %s817_s8, 1024  }
 0x125   : > { %1170 = vsyncadd (!%p1084_p2), %s817_s8, 4294966272  ;;  %p12_p3 = scmp.ge.s32.totalorder %s1231_s15, 4   ;;  %s1392_s9 = smov %s1177_s10 }
 0x126   : > { %s1393_s10 = smov %s1181_s11  ;;  %s1394_s11 = smov %s1242_s18 }
 0x127   : > { %s1395_s12 = smov %s1231_s15  ;;  %14 = sbr.rel (!%p12_p3) target bundleno = 3 (0x3), region = 64 }
 0x12e   :  { %822 = vsyncpa [#allocation3], 1 }
 0x12f   :  { %824 = vsyncpa [#allocation3 + $0x1], 1 }

</bundles_post_ra>
